<compile_context>
chip_gen: v7x
topology: tpu7x:2x2x1
jax: 0.10.0
libtpu: 0.0.40
codegen_flags: <defaults>
</compile_context>

<pallas_src>
import jax
import jax.numpy as jnp
from jax import lax
from jax.experimental import pallas as pl
from jax.experimental.pallas import tpu as pltpu

# --- small, deterministic model dims ---
B, S, H, F, V = 2, 8, 32, 64, 128       # batch, seq, hidden, ffn, vocab
TB = 2 * B                              # wrong + correct sentences stacked on batch
P_DROP = 0.2
EPS_COS = 1e-8


# ---------------------------------------------------------------------------
# Single fused kernel: encoder block (all 2B rows at once) + SimCSE head.
# No grid: the whole problem is a few KB, far below VMEM on v5e/v6e/v7x, so a
# gridless single-block kernel removes all per-step / per-launch overhead.
# ---------------------------------------------------------------------------
def simcse_fused_kernel(x_ref, mask_ref, wqkv_ref, wo_ref, w1_ref, w2_ref,
                        rand_ref, sims_ref):
    x = x_ref[...]            # (2B, S, H)  rows 0..B-1 = wrong, B..2B-1 = correct
    mask = mask_ref[...]      # (2B, 1, S)  1.0 = keep, 0.0 = pad

    def rmsnorm(v):
        var = jnp.mean(v * v, axis=-1, keepdims=True)
        return v * lax.rsqrt(var + 1e-6)

    # --- self-attention (fused QKV: one (H, 3H) MXU push instead of three) ---
    xn = rmsnorm(x)
    qkv = jnp.dot(xn.reshape(TB * S, H), wqkv_ref[...],
                  preferred_element_type=jnp.float32).reshape(TB, S, 3 * H)
    q = qkv[:, :, 0:H]
    k = qkv[:, :, H:2 * H]
    v = qkv[:, :, 2 * H:3 * H]

    scores = jnp.einsum('bqh,bkh->bqk', q, k,
                        preferred_element_type=jnp.float32) * (1.0 / (H ** 0.5))
    scores = scores + (mask - 1.0) * 1e9                  # key-mask over queries
    scores = scores - jnp.max(scores, axis=-1, keepdims=True)
    p = jnp.exp(scores)
    denom = jnp.maximum(jnp.sum(p, axis=-1, keepdims=True), 1e-20)  # pad-row safe
    p = p * pl.reciprocal(denom, approx=True)             # EUP slot, VPU stays free
    ctx = jnp.einsum('bqk,bkh->bqh', p, v, preferred_element_type=jnp.float32)

    x = x + jnp.dot(ctx.reshape(TB * S, H), wo_ref[...],
                    preferred_element_type=jnp.float32).reshape(TB, S, H)

    # --- feed-forward ---
    xn2 = rmsnorm(x)
    h = jnp.maximum(jnp.dot(xn2.reshape(TB * S, H), w1_ref[...],
                            preferred_element_type=jnp.float32), 0.0)
    x = x + jnp.dot(h, w2_ref[...],
                    preferred_element_type=jnp.float32).reshape(TB, S, H)

    # --- SimCSE head: Dropout(p=0.2) x4 + cosine over flattened (S*H) ---
    w_h = x[0:B]       # wrong-sentence hidden states   (B, S, H)
    c_h = x[B:TB]      # correct-sentence hidden states (B, S, H)

    inv_keep = 1.0 / (1.0 - P_DROP)
    keep = jnp.where(rand_ref[...] >= P_DROP, inv_keep, 0.0)   # (4, B, S, H)
    w1d = w_h * keep[0]
    w2d = w_h * keep[1]
    c1d = c_h * keep[2]
    c2d = c_h * keep[3]

    def cos(a, b):
        # Cosine over the flattened (S*H) axis == Frobenius inner product,
        # so no in-kernel lane-flatten reshape is needed.
        num = jnp.sum(jnp.sum(a * b, axis=-1), axis=-1, keepdims=True)   # (B, 1)
        na2 = jnp.sum(jnp.sum(a * a, axis=-1), axis=-1, keepdims=True)
        nb2 = jnp.sum(jnp.sum(b * b, axis=-1), axis=-1, keepdims=True)
        return num * lax.rsqrt(jnp.maximum(na2 * nb2, EPS_COS * EPS_COS))

    # Single merged output: [w_similar | c_similar | different_1 | different_2]
    sims_ref[...] = jnp.concatenate(
        [cos(w1d, w2d), cos(c1d, c2d), cos(w1d, c2d), cos(w2d, c1d)], axis=-1)


# ---------------------------------------------------------------------------
# Full forward (train_embed=True branch of SimCSE_model.forward)
# ---------------------------------------------------------------------------
@jax.jit
def simcse_forward(params, correct_sent, correct_sent_mask,
                   wrong_sent, wrong_sent_mask, dropout_key):
    emb = params["emb"]
    wqkv, wo, w1, w2 = params["enc"]

    # Both sentences share one encoder pass: concat along batch ([wrong; correct]).
    ids = jnp.concatenate([wrong_sent, correct_sent], axis=0)                 # (2B, S)
    mask = jnp.concatenate([wrong_sent_mask, correct_sent_mask], axis=0)
    mask = mask.astype(jnp.float32)[:, None, :]                               # (2B, 1, S)
    x = jnp.take(emb, ids, axis=0).astype(jnp.float32)                        # (2B, S, H)

    # The reference runs the (deterministic, eval-mode) encoder twice per
    # sentence; both passes are identical, so the SimCSE variation comes from
    # the four independent Dropout(0.2) draws applied in-kernel.
    # TODO(synk): dropout bits are drawn host-side because pltpu.prng_seed has
    # no interpret/CPU lowering; the keep-mask + scaling stay inside the kernel.
    rand = jax.random.uniform(dropout_key, (4, B, S, H), jnp.float32)

    sims = pl.pallas_call(
        simcse_fused_kernel,
        out_shape=jax.ShapeDtypeStruct((B, 4), jnp.float32),
        in_specs=[pl.BlockSpec(memory_space=pltpu.MemorySpace.VMEM)] * 7,
        out_specs=pl.BlockSpec(memory_space=pltpu.MemorySpace.VMEM),
    )(x, mask, wqkv, wo, w1, w2, rand)

    return sims[:, 0], sims[:, 1], sims[:, 2], sims[:, 3]


def init_params(key):
    ke, kqkv, ko, k1, k2 = jax.random.split(key, 5)
    scale_h = 1.0 / (H ** 0.5)
    scale_f = 1.0 / (F ** 0.5)
    emb = jax.random.normal(ke, (V, H), jnp.float32) * 0.02
    enc = (
        jax.random.normal(kqkv, (H, 3 * H), jnp.float32) * scale_h,   # fused Wq|Wk|Wv
        jax.random.normal(ko, (H, H), jnp.float32) * scale_h,
        jax.random.normal(k1, (H, F), jnp.float32) * scale_h,
        jax.random.normal(k2, (F, H), jnp.float32) * scale_f,
    )
    return {"emb": emb, "enc": enc}


if __name__ == "__main__":
    root = jax.random.PRNGKey(0)
    kp, kc, kw, kd = jax.random.split(root, 4)

    params = init_params(kp)

    correct_sent = jax.random.randint(kc, (B, S), 0, V, dtype=jnp.int32)
    wrong_sent = jax.random.randint(kw, (B, S), 0, V, dtype=jnp.int32)

    pos = jnp.arange(S)[None, :]
    correct_sent_mask = (pos < jnp.array([[8], [6]])).astype(jnp.int32)
    wrong_sent_mask = (pos < jnp.array([[7], [8]])).astype(jnp.int32)

    outs = simcse_forward(params, correct_sent, correct_sent_mask,
                          wrong_sent, wrong_sent_mask, kd)
    outs = jax.block_until_ready(outs)

    w_similar, c_similar, different_1, different_2 = outs
    assert w_similar.shape == (B,) and c_similar.shape == (B,)
    assert different_1.shape == (B,) and different_2.shape == (B,)
    assert all(bool(jnp.all(jnp.isfinite(o))) for o in outs)

    print("KERNEL_OK")
</pallas_src>

<mosaic_0001>
module attributes {stable_mosaic.version = 11 : i64} {
  func.func @simcse_fused_kernel(%arg0: memref<4x8x32xf32, #tpu.memory_space<vmem>>, %arg1: memref<4x1x8xf32, #tpu.memory_space<vmem>>, %arg2: memref<32x96xf32, #tpu.memory_space<vmem>>, %arg3: memref<32x32xf32, #tpu.memory_space<vmem>>, %arg4: memref<32x64xf32, #tpu.memory_space<vmem>>, %arg5: memref<64x32xf32, #tpu.memory_space<vmem>>, %arg6: memref<4x2x8x32xf32, #tpu.memory_space<vmem>>, %arg7: memref<2x4xf32, #tpu.memory_space<vmem>>) attributes {dimension_semantics = [], scalar_prefetch = 0 : i64, scratch_operands = 0 : i64, tpu.core_type = #tpu.core_type<tc>} {
    %c0 = arith.constant 0 : index
    %c0_0 = arith.constant 0 : index
    %c0_1 = arith.constant 0 : index
    %0 = vector.load %arg0[%c0, %c0_0, %c0_1] : memref<4x8x32xf32, #tpu.memory_space<vmem>>, vector<4x8x32xf32>
    %c0_2 = arith.constant 0 : index
    %c0_3 = arith.constant 0 : index
    %c0_4 = arith.constant 0 : index
    %1 = vector.load %arg1[%c0_2, %c0_3, %c0_4] : memref<4x1x8xf32, #tpu.memory_space<vmem>>, vector<4x1x8xf32>
    %2 = arith.mulf %0, %0 : vector<4x8x32xf32>
    %cst = arith.constant dense<0.000000e+00> : vector<4x8xf32>
    %3 = vector.multi_reduction <add>, %2, %cst [2] : vector<4x8x32xf32> to vector<4x8xf32>
    %4 = vector.shape_cast %3 : vector<4x8xf32> to vector<4x8x1xf32>
    %cst_5 = arith.constant 3.200000e+01 : f32
    %5 = vector.broadcast %cst_5 : f32 to vector<4x8x1xf32>
    %6 = arith.divf %4, %5 : vector<4x8x1xf32>
    %cst_6 = arith.constant 9.99999997E-7 : f32
    %7 = vector.broadcast %cst_6 : f32 to vector<4x8x1xf32>
    %8 = arith.addf %6, %7 : vector<4x8x1xf32>
    %9 = math.rsqrt %8 : vector<4x8x1xf32>
    %10 = vector.broadcast %9 : vector<4x8x1xf32> to vector<4x8x32xf32>
    %11 = arith.mulf %0, %10 : vector<4x8x32xf32>
    %12 = vector.shape_cast %11 : vector<4x8x32xf32> to vector<32x32xf32>
    %c0_7 = arith.constant 0 : index
    %c0_8 = arith.constant 0 : index
    %13 = vector.load %arg2[%c0_7, %c0_8] : memref<32x96xf32, #tpu.memory_space<vmem>>, vector<32x96xf32>
    %cst_9 = arith.constant dense<0.000000e+00> : vector<32x96xf32>
    %14 = tpu.matmul %12, %13, %cst_9 {dimension_numbers = #tpu.dot_dimension_numbers<[1], [0], [0], [1], [0, 0, 1, 1], [], []>} : vector<32x32xf32>, vector<32x96xf32>, vector<32x96xf32> -> vector<32x96xf32>
    %15 = vector.shape_cast %14 : vector<32x96xf32> to vector<4x8x96xf32>
    %16 = vector.extract_strided_slice %15 {offsets = [0, 0, 0], sizes = [4, 8, 32], strides = [1, 1, 1]} : vector<4x8x96xf32> to vector<4x8x32xf32>
    %17 = vector.extract_strided_slice %15 {offsets = [0, 0, 32], sizes = [4, 8, 32], strides = [1, 1, 1]} : vector<4x8x96xf32> to vector<4x8x32xf32>
    %18 = vector.extract_strided_slice %15 {offsets = [0, 0, 64], sizes = [4, 8, 32], strides = [1, 1, 1]} : vector<4x8x96xf32> to vector<4x8x32xf32>
    "tpu.trace_start"() <{level = 10 : i32, message = "bqh,bkh->bqk"}> : () -> ()
    %cst_10 = arith.constant dense<0.000000e+00> : vector<4x8x8xf32>
    %19 = tpu.matmul %16, %17, %cst_10 {dimension_numbers = #tpu.dot_dimension_numbers<[2], [2], [1], [1], [0, 0, 0, 1, 1, 1], [0], [0]>} : vector<4x8x32xf32>, vector<4x8x32xf32>, vector<4x8x8xf32> -> vector<4x8x8xf32>
    "tpu.trace_stop"() : () -> ()
    %cst_11 = arith.constant 0.176776692 : f32
    %20 = vector.broadcast %cst_11 : f32 to vector<4x8x8xf32>
    %21 = arith.mulf %19, %20 : vector<4x8x8xf32>
    %cst_12 = arith.constant 1.000000e+00 : f32
    %22 = vector.broadcast %cst_12 : f32 to vector<4x1x8xf32>
    %23 = arith.subf %1, %22 : vector<4x1x8xf32>
    %cst_13 = arith.constant 1.000000e+09 : f32
    %24 = vector.broadcast %cst_13 : f32 to vector<4x1x8xf32>
    %25 = arith.mulf %23, %24 : vector<4x1x8xf32>
    %26 = vector.broadcast %25 : vector<4x1x8xf32> to vector<4x8x8xf32>
    %27 = arith.addf %21, %26 : vector<4x8x8xf32>
    %cst_14 = arith.constant dense<0xFF800000> : vector<4x8xf32>
    %28 = vector.multi_reduction <maximumf>, %27, %cst_14 [2] : vector<4x8x8xf32> to vector<4x8xf32>
    %29 = vector.shape_cast %28 : vector<4x8xf32> to vector<4x8x1xf32>
    %30 = vector.broadcast %29 : vector<4x8x1xf32> to vector<4x8x8xf32>
    %31 = arith.subf %27, %30 : vector<4x8x8xf32>
    %32 = math.exp %31 : vector<4x8x8xf32>
    %cst_15 = arith.constant dense<0.000000e+00> : vector<4x8xf32>
    %33 = vector.multi_reduction <add>, %32, %cst_15 [2] : vector<4x8x8xf32> to vector<4x8xf32>
    %34 = vector.shape_cast %33 : vector<4x8xf32> to vector<4x8x1xf32>
    %cst_16 = arith.constant 9.99999968E-21 : f32
    %35 = vector.broadcast %cst_16 : f32 to vector<4x8x1xf32>
    %36 = arith.maximumf %34, %35 : vector<4x8x1xf32>
    %37 = tpu.reciprocal %36 {approx = true} : vector<4x8x1xf32> -> vector<4x8x1xf32>
    %38 = vector.broadcast %37 : vector<4x8x1xf32> to vector<4x8x8xf32>
    %39 = arith.mulf %32, %38 : vector<4x8x8xf32>
    "tpu.trace_start"() <{level = 10 : i32, message = "bqk,bkh->bqh"}> : () -> ()
    %cst_17 = arith.constant dense<0.000000e+00> : vector<4x8x32xf32>
    %40 = tpu.matmul %39, %18, %cst_17 {dimension_numbers = #tpu.dot_dimension_numbers<[2], [1], [1], [2], [0, 0, 0, 1, 1, 2], [0], [0]>} : vector<4x8x8xf32>, vector<4x8x32xf32>, vector<4x8x32xf32> -> vector<4x8x32xf32>
    "tpu.trace_stop"() : () -> ()
    %41 = vector.shape_cast %40 : vector<4x8x32xf32> to vector<32x32xf32>
    %c0_18 = arith.constant 0 : index
    %c0_19 = arith.constant 0 : index
    %42 = vector.load %arg3[%c0_18, %c0_19] : memref<32x32xf32, #tpu.memory_space<vmem>>, vector<32x32xf32>
    %cst_20 = arith.constant dense<0.000000e+00> : vector<32x32xf32>
    %43 = tpu.matmul %41, %42, %cst_20 {dimension_numbers = #tpu.dot_dimension_numbers<[1], [0], [0], [1], [0, 0, 1, 1], [], []>} : vector<32x32xf32>, vector<32x32xf32>, vector<32x32xf32> -> vector<32x32xf32>
    %44 = vector.shape_cast %43 : vector<32x32xf32> to vector<4x8x32xf32>
    %45 = arith.addf %0, %44 : vector<4x8x32xf32>
    %46 = arith.mulf %45, %45 : vector<4x8x32xf32>
    %cst_21 = arith.constant dense<0.000000e+00> : vector<4x8xf32>
    %47 = vector.multi_reduction <add>, %46, %cst_21 [2] : vector<4x8x32xf32> to vector<4x8xf32>
    %48 = vector.shape_cast %47 : vector<4x8xf32> to vector<4x8x1xf32>
    %cst_22 = arith.constant 3.200000e+01 : f32
    %49 = vector.broadcast %cst_22 : f32 to vector<4x8x1xf32>
    %50 = arith.divf %48, %49 : vector<4x8x1xf32>
    %cst_23 = arith.constant 9.99999997E-7 : f32
    %51 = vector.broadcast %cst_23 : f32 to vector<4x8x1xf32>
    %52 = arith.addf %50, %51 : vector<4x8x1xf32>
    %53 = math.rsqrt %52 : vector<4x8x1xf32>
    %54 = vector.broadcast %53 : vector<4x8x1xf32> to vector<4x8x32xf32>
    %55 = arith.mulf %45, %54 : vector<4x8x32xf32>
    %56 = vector.shape_cast %55 : vector<4x8x32xf32> to vector<32x32xf32>
    %c0_24 = arith.constant 0 : index
    %c0_25 = arith.constant 0 : index
    %57 = vector.load %arg4[%c0_24, %c0_25] : memref<32x64xf32, #tpu.memory_space<vmem>>, vector<32x64xf32>
    %cst_26 = arith.constant dense<0.000000e+00> : vector<32x64xf32>
    %58 = tpu.matmul %56, %57, %cst_26 {dimension_numbers = #tpu.dot_dimension_numbers<[1], [0], [0], [1], [0, 0, 1, 1], [], []>} : vector<32x32xf32>, vector<32x64xf32>, vector<32x64xf32> -> vector<32x64xf32>
    %cst_27 = arith.constant 0.000000e+00 : f32
    %59 = vector.broadcast %cst_27 : f32 to vector<32x64xf32>
    %60 = arith.maximumf %58, %59 : vector<32x64xf32>
    %c0_28 = arith.constant 0 : index
    %c0_29 = arith.constant 0 : index
    %61 = vector.load %arg5[%c0_28, %c0_29] : memref<64x32xf32, #tpu.memory_space<vmem>>, vector<64x32xf32>
    %cst_30 = arith.constant dense<0.000000e+00> : vector<32x32xf32>
    %62 = tpu.matmul %60, %61, %cst_30 {dimension_numbers = #tpu.dot_dimension_numbers<[1], [0], [0], [1], [0, 0, 1, 1], [], []>} : vector<32x64xf32>, vector<64x32xf32>, vector<32x32xf32> -> vector<32x32xf32>
    %63 = vector.shape_cast %62 : vector<32x32xf32> to vector<4x8x32xf32>
    %64 = arith.addf %45, %63 : vector<4x8x32xf32>
    %65 = vector.extract_strided_slice %64 {offsets = [0, 0, 0], sizes = [2, 8, 32], strides = [1, 1, 1]} : vector<4x8x32xf32> to vector<2x8x32xf32>
    %66 = vector.extract_strided_slice %64 {offsets = [2, 0, 0], sizes = [2, 8, 32], strides = [1, 1, 1]} : vector<4x8x32xf32> to vector<2x8x32xf32>
    %c0_31 = arith.constant 0 : index
    %c0_32 = arith.constant 0 : index
    %c0_33 = arith.constant 0 : index
    %c0_34 = arith.constant 0 : index
    %67 = vector.load %arg6[%c0_31, %c0_32, %c0_33, %c0_34] : memref<4x2x8x32xf32, #tpu.memory_space<vmem>>, vector<4x2x8x32xf32>
    %cst_35 = arith.constant 2.000000e-01 : f32
    %68 = vector.broadcast %cst_35 : f32 to vector<4x2x8x32xf32>
    %69 = arith.cmpf oge, %67, %68 : vector<4x2x8x32xf32>
    %cst_36 = arith.constant 1.250000e+00 : f32
    %cst_37 = arith.constant 0.000000e+00 : f32
    %70 = vector.broadcast %cst_36 : f32 to vector<4x2x8x32xf32>
    %71 = vector.broadcast %cst_37 : f32 to vector<4x2x8x32xf32>
    %72 = arith.select %69, %70, %71 : vector<4x2x8x32xi1>, vector<4x2x8x32xf32>
    %73 = vector.extract_strided_slice %72 {offsets = [0, 0, 0, 0], sizes = [1, 2, 8, 32], strides = [1, 1, 1, 1]} : vector<4x2x8x32xf32> to vector<1x2x8x32xf32>
    %74 = vector.shape_cast %73 : vector<1x2x8x32xf32> to vector<2x8x32xf32>
    %75 = arith.mulf %65, %74 : vector<2x8x32xf32>
    %76 = vector.extract_strided_slice %72 {offsets = [1, 0, 0, 0], sizes = [1, 2, 8, 32], strides = [1, 1, 1, 1]} : vector<4x2x8x32xf32> to vector<1x2x8x32xf32>
    %77 = vector.shape_cast %76 : vector<1x2x8x32xf32> to vector<2x8x32xf32>
    %78 = arith.mulf %65, %77 : vector<2x8x32xf32>
    %79 = vector.extract_strided_slice %72 {offsets = [2, 0, 0, 0], sizes = [1, 2, 8, 32], strides = [1, 1, 1, 1]} : vector<4x2x8x32xf32> to vector<1x2x8x32xf32>
    %80 = vector.shape_cast %79 : vector<1x2x8x32xf32> to vector<2x8x32xf32>
    %81 = arith.mulf %66, %80 : vector<2x8x32xf32>
    %82 = vector.extract_strided_slice %72 {offsets = [3, 0, 0, 0], sizes = [1, 2, 8, 32], strides = [1, 1, 1, 1]} : vector<4x2x8x32xf32> to vector<1x2x8x32xf32>
    %83 = vector.shape_cast %82 : vector<1x2x8x32xf32> to vector<2x8x32xf32>
    %84 = arith.mulf %66, %83 : vector<2x8x32xf32>
    %85 = arith.mulf %75, %78 : vector<2x8x32xf32>
    %cst_38 = arith.constant dense<0.000000e+00> : vector<2x8xf32>
    %86 = vector.multi_reduction <add>, %85, %cst_38 [2] : vector<2x8x32xf32> to vector<2x8xf32>
    %cst_39 = arith.constant dense<0.000000e+00> : vector<2xf32>
    %87 = vector.multi_reduction <add>, %86, %cst_39 [1] : vector<2x8xf32> to vector<2xf32>
    %88 = vector.shape_cast %87 : vector<2xf32> to vector<2x1xf32>
    %89 = arith.mulf %75, %75 : vector<2x8x32xf32>
    %cst_40 = arith.constant dense<0.000000e+00> : vector<2x8xf32>
    %90 = vector.multi_reduction <add>, %89, %cst_40 [2] : vector<2x8x32xf32> to vector<2x8xf32>
    %cst_41 = arith.constant dense<0.000000e+00> : vector<2xf32>
    %91 = vector.multi_reduction <add>, %90, %cst_41 [1] : vector<2x8xf32> to vector<2xf32>
    %92 = vector.shape_cast %91 : vector<2xf32> to vector<2x1xf32>
    %93 = arith.mulf %78, %78 : vector<2x8x32xf32>
    %cst_42 = arith.constant dense<0.000000e+00> : vector<2x8xf32>
    %94 = vector.multi_reduction <add>, %93, %cst_42 [2] : vector<2x8x32xf32> to vector<2x8xf32>
    %cst_43 = arith.constant dense<0.000000e+00> : vector<2xf32>
    %95 = vector.multi_reduction <add>, %94, %cst_43 [1] : vector<2x8xf32> to vector<2xf32>
    %96 = vector.shape_cast %95 : vector<2xf32> to vector<2x1xf32>
    %97 = arith.mulf %92, %96 : vector<2x1xf32>
    %cst_44 = arith.constant 1.000000e-16 : f32
    %98 = vector.broadcast %cst_44 : f32 to vector<2x1xf32>
    %99 = arith.maximumf %97, %98 : vector<2x1xf32>
    %100 = math.rsqrt %99 : vector<2x1xf32>
    %101 = arith.mulf %88, %100 : vector<2x1xf32>
    %102 = arith.mulf %81, %84 : vector<2x8x32xf32>
    %cst_45 = arith.constant dense<0.000000e+00> : vector<2x8xf32>
    %103 = vector.multi_reduction <add>, %102, %cst_45 [2] : vector<2x8x32xf32> to vector<2x8xf32>
    %cst_46 = arith.constant dense<0.000000e+00> : vector<2xf32>
    %104 = vector.multi_reduction <add>, %103, %cst_46 [1] : vector<2x8xf32> to vector<2xf32>
    %105 = vector.shape_cast %104 : vector<2xf32> to vector<2x1xf32>
    %106 = arith.mulf %81, %81 : vector<2x8x32xf32>
    %cst_47 = arith.constant dense<0.000000e+00> : vector<2x8xf32>
    %107 = vector.multi_reduction <add>, %106, %cst_47 [2] : vector<2x8x32xf32> to vector<2x8xf32>
    %cst_48 = arith.constant dense<0.000000e+00> : vector<2xf32>
    %108 = vector.multi_reduction <add>, %107, %cst_48 [1] : vector<2x8xf32> to vector<2xf32>
    %109 = vector.shape_cast %108 : vector<2xf32> to vector<2x1xf32>
    %110 = arith.mulf %84, %84 : vector<2x8x32xf32>
    %cst_49 = arith.constant dense<0.000000e+00> : vector<2x8xf32>
    %111 = vector.multi_reduction <add>, %110, %cst_49 [2] : vector<2x8x32xf32> to vector<2x8xf32>
    %cst_50 = arith.constant dense<0.000000e+00> : vector<2xf32>
    %112 = vector.multi_reduction <add>, %111, %cst_50 [1] : vector<2x8xf32> to vector<2xf32>
    %113 = vector.shape_cast %112 : vector<2xf32> to vector<2x1xf32>
    %114 = arith.mulf %109, %113 : vector<2x1xf32>
    %cst_51 = arith.constant 1.000000e-16 : f32
    %115 = vector.broadcast %cst_51 : f32 to vector<2x1xf32>
    %116 = arith.maximumf %114, %115 : vector<2x1xf32>
    %117 = math.rsqrt %116 : vector<2x1xf32>
    %118 = arith.mulf %105, %117 : vector<2x1xf32>
    %119 = arith.mulf %75, %84 : vector<2x8x32xf32>
    %cst_52 = arith.constant dense<0.000000e+00> : vector<2x8xf32>
    %120 = vector.multi_reduction <add>, %119, %cst_52 [2] : vector<2x8x32xf32> to vector<2x8xf32>
    %cst_53 = arith.constant dense<0.000000e+00> : vector<2xf32>
    %121 = vector.multi_reduction <add>, %120, %cst_53 [1] : vector<2x8xf32> to vector<2xf32>
    %122 = vector.shape_cast %121 : vector<2xf32> to vector<2x1xf32>
    %123 = arith.mulf %75, %75 : vector<2x8x32xf32>
    %cst_54 = arith.constant dense<0.000000e+00> : vector<2x8xf32>
    %124 = vector.multi_reduction <add>, %123, %cst_54 [2] : vector<2x8x32xf32> to vector<2x8xf32>
    %cst_55 = arith.constant dense<0.000000e+00> : vector<2xf32>
    %125 = vector.multi_reduction <add>, %124, %cst_55 [1] : vector<2x8xf32> to vector<2xf32>
    %126 = vector.shape_cast %125 : vector<2xf32> to vector<2x1xf32>
    %127 = arith.mulf %84, %84 : vector<2x8x32xf32>
    %cst_56 = arith.constant dense<0.000000e+00> : vector<2x8xf32>
    %128 = vector.multi_reduction <add>, %127, %cst_56 [2] : vector<2x8x32xf32> to vector<2x8xf32>
    %cst_57 = arith.constant dense<0.000000e+00> : vector<2xf32>
    %129 = vector.multi_reduction <add>, %128, %cst_57 [1] : vector<2x8xf32> to vector<2xf32>
    %130 = vector.shape_cast %129 : vector<2xf32> to vector<2x1xf32>
    %131 = arith.mulf %126, %130 : vector<2x1xf32>
    %cst_58 = arith.constant 1.000000e-16 : f32
    %132 = vector.broadcast %cst_58 : f32 to vector<2x1xf32>
    %133 = arith.maximumf %131, %132 : vector<2x1xf32>
    %134 = math.rsqrt %133 : vector<2x1xf32>
    %135 = arith.mulf %122, %134 : vector<2x1xf32>
    %136 = arith.mulf %78, %81 : vector<2x8x32xf32>
    %cst_59 = arith.constant dense<0.000000e+00> : vector<2x8xf32>
    %137 = vector.multi_reduction <add>, %136, %cst_59 [2] : vector<2x8x32xf32> to vector<2x8xf32>
    %cst_60 = arith.constant dense<0.000000e+00> : vector<2xf32>
    %138 = vector.multi_reduction <add>, %137, %cst_60 [1] : vector<2x8xf32> to vector<2xf32>
    %139 = vector.shape_cast %138 : vector<2xf32> to vector<2x1xf32>
    %140 = arith.mulf %78, %78 : vector<2x8x32xf32>
    %cst_61 = arith.constant dense<0.000000e+00> : vector<2x8xf32>
    %141 = vector.multi_reduction <add>, %140, %cst_61 [2] : vector<2x8x32xf32> to vector<2x8xf32>
    %cst_62 = arith.constant dense<0.000000e+00> : vector<2xf32>
    %142 = vector.multi_reduction <add>, %141, %cst_62 [1] : vector<2x8xf32> to vector<2xf32>
    %143 = vector.shape_cast %142 : vector<2xf32> to vector<2x1xf32>
    %144 = arith.mulf %81, %81 : vector<2x8x32xf32>
    %cst_63 = arith.constant dense<0.000000e+00> : vector<2x8xf32>
    %145 = vector.multi_reduction <add>, %144, %cst_63 [2] : vector<2x8x32xf32> to vector<2x8xf32>
    %cst_64 = arith.constant dense<0.000000e+00> : vector<2xf32>
    %146 = vector.multi_reduction <add>, %145, %cst_64 [1] : vector<2x8xf32> to vector<2xf32>
    %147 = vector.shape_cast %146 : vector<2xf32> to vector<2x1xf32>
    %148 = arith.mulf %143, %147 : vector<2x1xf32>
    %cst_65 = arith.constant 1.000000e-16 : f32
    %149 = vector.broadcast %cst_65 : f32 to vector<2x1xf32>
    %150 = arith.maximumf %148, %149 : vector<2x1xf32>
    %151 = math.rsqrt %150 : vector<2x1xf32>
    %152 = arith.mulf %139, %151 : vector<2x1xf32>
    %153 = tpu.concatenate %101, %118, %135, %152 in 1 : vector<2x1xf32>, vector<2x1xf32>, vector<2x1xf32>, vector<2x1xf32> -> vector<2x4xf32>
    %c0_66 = arith.constant 0 : index
    %c0_67 = arith.constant 0 : index
    %154 = vector.load %arg7[%c0_66, %c0_67] : memref<2x4xf32, #tpu.memory_space<vmem>>, vector<2x4xf32>
    tpu.vector_store %arg7[%c0_66, %c0_67], %153 {strides = array<i32>} : memref<2x4xf32, #tpu.memory_space<vmem>>, vector<2x4xf32>,
    return
  }
}

</mosaic_0001>

<bundles_post_ra>
// kernel: simcse_forward.1
= control target key start
LH: loop header
LB: loop body
LE: loop exit
PB: predicated region body
PF: predicated region fallthrough
CT: control target
= control target key end

     0   :  { %vm38_vm0 = vcmask 261120   ;;  %v1742_v38 = vmov 0.0   ;;  %vm1743_vm1 = vmmov 0   ;;  %v493_v47 = vlaneseq  ;;  %s2087_s0 = inlined_call_operand.vmem [shape: f32[4,8,32], index: 0, kind: input, shape index: {}]   ;;  %s2088_s2 = inlined_call_operand.vmem [shape: f32[32,96], index: 2, kind: input, shape index: {}]   ;;  %s2089_s1 = inlined_call_operand.vmem [shape: f32[4,1,8], index: 1, kind: input, shape index: {}]   ;;  %s2090_s3 = inlined_call_operand.vmem [shape: f32[32,32], index: 3, kind: input, shape index: {}]   ;;  %s2091_s4 = inlined_call_operand.vmem [shape: f32[32,64], index: 4, kind: input, shape index: {}]   ;;  %s2092_s5 = inlined_call_operand.vmem [shape: f32[64,32], index: 5, kind: input, shape index: {}]   ;;  %s2093_s6 = inlined_call_operand.vmem [shape: f32[4,2,8,32], index: 6, kind: input, shape index: {}]   ;;  %s2094_s7 = inlined_call_operand.vmem [shape: f32[2,4], index: 7, kind: output, shape index: {}]  }
   0x1   :  { %v1789_v0 = vld [vmem:[%s2087_s0] sm:$0xff]  ;;  %v1794_v1 = vld [vmem:[%s2087_s0 + $0x10] sm:$0xff]  ;;  %v1799_v2 = vld [vmem:[%s2087_s0 + $0x8] sm:$0xff]  ;;  %1573 = vmatprep.subr.mxu1 %v1742_v38  ;;  %1575 = vmatprep.mubr.msk.f32.mxu1 %vm1743_vm1, %v1742_v38  ;;  %vm517_vm2 = vcmask 64512   ;;  %vm1120_vm3 = vcmask 523264   ;;  %vm1274_vm12 = vcmask 1041409  }
   0x2   :  { %v34_v3 = vmul.f32 %v1789_v0, %v1789_v0  ;;  %v36_v4 = vmul.f32 %v1794_v1, %v1794_v1  ;;  %v35_v5 = vmul.f32 %v1799_v2, %v1799_v2  ;;  %v1810_v6 = vld [vmem:[%s2087_s0 + $0x18] sm:$0xff]  ;;  %v68_v12 = vld [vmem:[%s2088_s2] sm:$0xff]  ;;  %v69_v13 = vld [vmem:[%s2088_s2 + $0x8] sm:$0xff]  ;;  %v494_v48 = vshrl.u32 %v493_v47, 7 }
   0x3   :  { %v37_v7 = vmul.f32 %v1810_v6, %v1810_v6  ;;  %v70_v14 = vld [vmem:[%s2088_s2 + $0x10] sm:$0xff]  ;;  %v1658_v15 = vpack.c.bf16 %v69_v13, %v68_v12  ;;  %v71_v16 = vld [vmem:[%s2088_s2 + $0x18] sm:$0xff]  ;;  %s1744_s2 = smov 96   ;;  %v1265_v49 = vand.u32 127, %v493_v47  ;;  %v31_v51 = vld [vmem:[%s2089_s1 + $0x1] sm:$0x1] }
   0x4   :  { %v39_v8 = vsel %vm38_vm0, %v34_v3, 0.0  ;;  %v45_v9 = vsel %vm38_vm0, %v36_v4, 0.0  ;;  %v42_v10 = vsel %vm38_vm0, %v35_v5, 0.0  ;;  %v1662_v17 = vpack.c.bf16 %v71_v16, %v70_v14  ;;  %v30_v52 = vld [vmem:[%s2089_s1] sm:$0x1] }
   0x5   :  { %40 = vadd.xlane.f32.xlu0 %v39_v8  ;;  %46 = vadd.xlane.f32.xlu1 %v45_v9  ;;  %v48_v11 = vsel %vm38_vm0, %v37_v7, 0.0  ;;  %v1880_v50 = vsub.s32 %v1265_v49, %v494_v48  ;;  %v1483_v53 = vadd.f32 -1.0, %v31_v51  ;;  %v1482_v54 = vadd.f32 -1.0, %v30_v52  ;;  %v32_v55 = vld [vmem:[%s2089_s1 + $0x2] sm:$0x1] }
   0x6   :  { %1659 = vmatprep.subr.bf16.mxu0 %v1658_v15  ;;  %v495_v57 = vsub.s32 0, %v494_v48  ;;  %v1484_v59 = vadd.f32 -1.0, %v32_v55  ;;  %v33_v60 = vld [vmem:[%s2089_s1 + $0x3] sm:$0x1]  ;;  %s1745_s1 = smov 64   ;;  %vm1277_vm13 = vcmask 58368  }
   0x7   :  { %1661 = vmatpush3.bf16.msra.mxu0 %v1658_v15  ;;  %v486_v56 = vmul.f32 1e+09, %v1483_v53  ;;  %v485_v58 = vmul.f32 1e+09, %v1482_v54  ;;  %v1485_v4 = vadd.f32 -1.0, %v33_v60  ;;  %vm1458_vm14 = vcmask 7168  }
   0x8   :  { %1663 = vmatprep.subr.bf16.mxu0 %v1662_v17  ;;  %v487_v3 = vmul.f32 1e+09, %v1484_v59  ;;  %v871_v59 = vld [vmem:[%s2090_s3 + $0x8] sm:$0xff]  ;;  %vm1460_vm15 = vcmask 15360  }
   0x9   :  { %43 = vadd.xlane.f32.xlu0 %v42_v10  ;;  %49 = vadd.xlane.f32.xlu1 %v48_v11  ;;  %v500_v61 = vrot.slane %v486_v56, %v495_v57  ;;  %v496_v63 = vrot.slane %v485_v58, %v495_v57  ;;  %v488_v14 = vmul.f32 1e+09, %v1485_v4  ;;  %v872_v4 = vld [vmem:[%s2090_s3 + $0x10] sm:$0xff] }
   0xa   :  { %v504_v13 = vrot.slane %v487_v3, %v495_v57 }
   0xb   :  { %1665 = vmatpush3.bf16.msra.mxu0 %v1662_v17 }
   0xc   :  { %1568 = vmatprep.subr.mxu0 %v1742_v38 }
  0x92   :  { %v41_v18 = vpop.xlane.xlu0 %40  ;;  %v47_v19 = vpop.xlane.xlu1 %46 }
  0x93   :  { %v52_v20 = vmul.f32 0.03125, %v41_v18  ;;  %v54_v21 = vmul.f32 0.03125, %v47_v19 }
  0x95   :  { %v56_v22 = vadd.f32 1e-06, %v52_v20  ;;  %v58_v23 = vadd.f32 1e-06, %v54_v21  ;;  %v508_v21 = vrot.slane %v488_v14, %v495_v57 }
  0x96   :  { %v44_v24 = vpop.xlane.xlu0 %43  ;;  %v50_v25 = vpop.xlane.xlu1 %49 }
  0x97   :  { %1702 = vrsqrt.f32 %v56_v22  ;;  %v53_v26 = vmul.f32 0.03125, %v44_v24  ;;  %v55_v27 = vmul.f32 0.03125, %v50_v25 }
  0x98   :  { %1704 = vrsqrt.f32 %v58_v23 }
  0x99   :  { %v57_v28 = vadd.f32 1e-06, %v53_v26  ;;  %v59_v29 = vadd.f32 1e-06, %v55_v27 }
  0x9b   :  { %1706 = vrsqrt.f32 %v57_v28 }
  0x9c   :  { %1708 = vrsqrt.f32 %v59_v29 }
  0xa1   :  { %v1703_v30 = vpop.eup %1702 }
  0xa2   :  { %v1705_v31 = vpop.eup %1704  ;;  %v64_v32 = vmul.f32 %v1703_v30, %v1789_v0 }
  0xa3   :  { %v66_v34 = vmul.f32 %v1705_v31, %v1794_v1 }
  0xa4   :  { %1562 = vmatprep.mubr.msk.f32.mxu0 %vm38_vm0, %v64_v32 }
  0xa5   :  { %v1707_v33 = vpop.eup %1706 }
  0xa6   :  { %v1709_v35 = vpop.eup %1708  ;;  %v65_v36 = vmul.f32 %v1707_v33, %v1799_v2 }
  0xa7   :  { %v67_v37 = vmul.f32 %v1709_v35, %v1810_v6 }
  0xa8   :  { %1563 = vmatmul.mubr.msk.f32.vlgmr.msra.gmra.mrb[0].mxu0 %vm38_vm0, %v65_v36 }
  0xa9   :  { %1565 = vmatprep.mubr.msk.f32.mxu0 %vm38_vm0, %v66_v34 }
  0xac   :  { %1566 = vmatmul.mubr.msk.f32.gmra.mrb[2].mxu0 %vm38_vm0, %v67_v37 }
  0xad   :  { %1570 = vmatprep.mubr.msk.f32.mxu0 %vm1743_vm1, %v1742_v38 }
 0x17b   :  { %v1844_v39 = vpop.f32.mrb[0].mxu0 }
 0x17c   :  { %247 = vrot.lane.b32.xlu1 %v1844_v39, %s1744_s2  ;;  %v1847_v40 = vpop.f32.mrb[1].mxu0 }
 0x17d   :  { %170 = vrot.lane.b32.xlu0 %v1847_v40, %s1744_s2 }
 0x17f   :  { %v1850_v41 = vpop.f32.mrb[2].mxu0 }
 0x180   :  { %v1852_v42 = vpop.f32.mrb[3].mxu0 }
 0x181   :  { %324 = vrot.lane.b32.xlu1 %v1852_v42, %s1744_s2 }
 0x185   :  { %401 = vrot.lane.b32.xlu1 %v1850_v41, %s1744_s2 }
 0x1ee   :  { %v248_v43 = vpop.permute.xlu1 %247 }
 0x1ef   :  { %1574 = vmatpush3.xpose.msk.msra.mxu1 %vm38_vm0, %v248_v43  ;;  %v171_v44 = vpop.permute.xlu0 %170 }
 0x1f0   :  { %1569 = vmatpush3.xpose.msk.msra.mxu0 %vm38_vm0, %v171_v44  ;;  %1578 = vmatprep.subr.mxu1 %v1742_v38 }
 0x1f1   :  { %1583 = vmatprep.subr.mxu0 %v1742_v38 }
 0x1f2   :  { %1576 = vmatmul.mubr.msk.f32.vlgmr.msra.gmra.mrb[0].mxu1 %vm38_vm0, %v1844_v39 }
 0x1f3   :  { %1571 = vmatmul.mubr.msk.f32.vlgmr.msra.gmra.mrb[4].mxu0 %vm38_vm0, %v1847_v40  ;;  %v325_v45 = vpop.permute.xlu1 %324  ;;  %1580 = vmatprep.mubr.msk.f32.mxu1 %vm1743_vm1, %v1742_v38 }
 0x1f4   :  { %1579 = vmatpush3.xpose.msk.msra.mxu1 %vm38_vm0, %v325_v45  ;;  %1585 = vmatprep.mubr.msk.f32.mxu0 %vm1743_vm1, %v1742_v38 }
 0x1f5   :  { %1588 = vmatprep.subr.mxu1 %v1742_v38 }
 0x1f7   :  { %1581 = vmatmul.mubr.msk.f32.vlgmr.msra.gmra.mrb[2].mxu1 %vm38_vm0, %v1852_v42  ;;  %v402_v46 = vpop.permute.xlu1 %401 }
 0x1f8   :  { %1584 = vmatpush3.xpose.msk.msra.mxu0 %vm38_vm0, %v402_v46  ;;  %1590 = vmatprep.mubr.msk.f32.mxu1 %vm1743_vm1, %v1742_v38 }
 0x1f9   :  { %1593 = vmatprep.subr.mxu0 %v1742_v38 }
 0x1fb   :  { %1586 = vmatmul.mubr.msk.f32.vlgmr.msra.gmra.mrb[6].mxu0 %vm38_vm0, %v1850_v41 }
 0x1fc   :  { %1595 = vmatprep.mubr.msk.f32.mxu0 %vm1743_vm1, %v1742_v38 }
 0x2c5   :  { %v319_v62 = vpop.f32.mrb[0].mxu1 }
 0x2c6   :  { %v478_v5 = vmul.f32 0.17677669, %v319_v62  ;;  %v242_v7 = vpop.f32.mrb[4].mxu0  ;;  %v1577_v8 = vpop.f32.mrb[1].mxu1 }
 0x2c7   :  { %v477_v9 = vmul.f32 0.17677669, %v242_v7  ;;  %v1572_v10 = vpop.f32.mrb[5].mxu0 }
 0x2c8   :  { %v514_v11 = vadd.f32 %v500_v61, %v478_v5  ;;  %v873_v5 = vld [vmem:[%s2090_s3 + $0x18] sm:$0xff] }
 0x2c9   :  { %v513_v12 = vadd.f32 %v496_v63, %v477_v9  ;;  %v1670_v10 = vpack.c.bf16 %v873_v5, %v872_v4 }
 0x2ca   :  { %v396_v15 = vpop.f32.mrb[2].mxu1  ;;  %v521_v16 = vsel %vm517_vm2, %v514_v11, -inf }
 0x2cb   :  { %v479_v17 = vmul.f32 0.17677669, %v396_v15  ;;  %522 = vmax.xlane.f32.xlu1 %v521_v16  ;;  %v1582_v18 = vpop.f32.mrb[3].mxu1  ;;  %v518_v19 = vsel %vm517_vm2, %v513_v12, -inf }
 0x2cc   :  { %519 = vmax.xlane.f32.xlu0 %v518_v19 }
 0x2cd   :  { %v515_v20 = vadd.f32 %v504_v13, %v479_v17 }
 0x2ce   :  { %v473_v22 = vpop.f32.mrb[6].mxu0 }
 0x2cf   :  { %v480_v23 = vmul.f32 0.17677669, %v473_v22  ;;  %v1587_v24 = vpop.f32.mrb[7].mxu0  ;;  %v524_v25 = vsel %vm517_vm2, %v515_v20, -inf }
 0x2d0   :  { %525 = vmax.xlane.f32.xlu0 %v524_v25 }
 0x2d1   :  { %v516_v26 = vadd.f32 %v508_v21, %v480_v23 }
 0x2d3   :  { %v527_v27 = vsel %vm517_vm2, %v516_v26, -inf }
 0x2d4   :  { %528 = vmax.xlane.f32.xlu0 %v527_v27 }
 0x358   :  { %v523_v28 = vpop.xlane.xlu1 %522 }
 0x359   :  { %v531_v29 = vsub.f32 %v514_v11, %v523_v28  ;;  %v520_v30 = vpop.xlane.xlu0 %519 }
 0x35a   :  { %v530_v31 = vsub.f32 %v513_v12, %v520_v30 }
 0x35b   :  { %v536_v32 = vmul.f32 1.442695, %v531_v29 }
 0x35c   :  { %v534_v33 = vmul.f32 1.442695, %v530_v31 }
 0x35d   :  { %1710 = vpow2.f32 %v536_v32  ;;  %v526_v34 = vpop.xlane.xlu0 %525  ;;  %v1009_v32 = vld [vmem:[%s2091_s4 + $0x10] sm:$0xff] }
 0x35e   :  { %1712 = vpow2.f32 %v534_v33  ;;  %v532_v35 = vsub.f32 %v515_v20, %v526_v34  ;;  %v1010_v34 = vld [vmem:[%s2091_s4 + $0x18] sm:$0xff] }
 0x360   :  { %v538_v36 = vmul.f32 1.442695, %v532_v35  ;;  %v1678_v35 = vpack.c.bf16 %v1010_v34, %v1009_v32 }
 0x361   :  { %v529_v48 = vpop.xlane.xlu0 %528 }
 0x362   :  { %1714 = vpow2.f32 %v538_v36  ;;  %v533_v49 = vsub.f32 %v516_v26, %v529_v48 }
 0x364   :  { %v540_v51 = vmul.f32 1.442695, %v533_v49  ;;  %v1114_v49 = vld [vmem:[%s2092_s5 + $0x10] sm:$0xff] }
 0x366   :  { %1716 = vpow2.f32 %v540_v51 }
 0x367   :  { %v1711_v37 = vpop.eup %1710 }
 0x368   :  { %v1713_v43 = vpop.eup %1712  ;;  %v545_v44 = vsel %vm517_vm2, %v1711_v37, 0.0 }
 0x369   :  { %546 = vadd.xlane.f32.xlu1 %v545_v44  ;;  %v542_v45 = vsel %vm517_vm2, %v1713_v43, 0.0 }
 0x36a   :  { %543 = vadd.xlane.f32.xlu0 %v542_v45 }
 0x36c   :  { %v1715_v46 = vpop.eup %1714 }
 0x36d   :  { %v548_v47 = vsel %vm517_vm2, %v1715_v46, 0.0 }
 0x36e   :  { %549 = vadd.xlane.f32.xlu0 %v548_v47 }
 0x370   :  { %v1717_v52 = vpop.eup %1716 }
 0x371   :  { %v551_v53 = vsel %vm517_vm2, %v1717_v52, 0.0 }
 0x37a   :  { %642 = vrot.lane.b32.xlu1 %v1844_v39, %s1745_s1 }
 0x37e   :  { %718 = vrot.lane.b32.xlu1 %v1852_v42, %s1745_s1 }
 0x384   :  { %566 = vrot.lane.b32.xlu0 %v1847_v40, %s1745_s1 }
 0x3a2   :  { %552 = vadd.xlane.f32.xlu1 %v551_v53 }
 0x3b3   :  { %794 = vrot.lane.b32.xlu1 %v1850_v41, %s1745_s1  ;;  %v870_v41 = vld [vmem:[%s2090_s3] sm:$0xff] }
 0x3b4   :  { %v1666_v3 = vpack.c.bf16 %v871_v59, %v870_v41 }
 0x3f6   :  { %v547_v54 = vpop.xlane.xlu1 %546 }
 0x3f7   :  { %v555_v55 = vmax.f32 %v547_v54, 1e-20  ;;  %v544_v56 = vpop.xlane.xlu0 %543  ;;  %v1116_v54 = vld [vmem:[%s2092_s5 + $0x20] sm:$0xff] }
 0x3f8   :  { %v554_v57 = vmax.f32 %v544_v56, 1e-20 }
 0x3f9   :  { %1718 = vrcp.f32 %v555_v55  ;;  %v1117_v55 = vld [vmem:[%s2092_s5 + $0x28] sm:$0xff] }
 0x3fa   :  { %1720 = vrcp.f32 %v554_v57  ;;  %v643_v39 = vpop.permute.xlu1 %642  ;;  %v1690_v56 = vpack.c.bf16 %v1117_v55, %v1116_v54  ;;  %v1227_v54 = vld [vmem:[%s2093_s6 + $0x28] sm:$0xff]  ;;  %v1229_v55 = vld [vmem:[%s2093_s6 + $0x38] sm:$0xff] }
 0x3fb   :  { %1594 = vmatpush3.msra.mxu0 %v643_v39  ;;  %v550_v42 = vpop.xlane.xlu0 %549  ;;  %vm1235_vm8 = vcmp.ge.f32.partialorder %v1227_v54, 0.2  ;;  %vm1237_vm9 = vcmp.ge.f32.partialorder %v1229_v55, 0.2 }
 0x3fc   :  { %v556_v40 = vmax.f32 %v550_v42, 1e-20  ;;  %1603 = vmatprep.subr.mxu0 %v1742_v38 }
 0x3fe   :  { %1722 = vrcp.f32 %v556_v40  ;;  %v719_v7 = vpop.permute.xlu1 %718 }
 0x3ff   :  { %v567_v58 = vpop.permute.xlu0 %566 }
 0x400   :  { %1589 = vmatpush3.msra.mxu1 %v567_v58 }
 0x401   :  { %1598 = vmatprep.subr.mxu1 %v1742_v38 }
 0x403   :  { %v1719_v60 = vpop.eup %1718 }
 0x404   :  { %v1721_v61 = vpop.eup %1720  ;;  %v563_v62 = vmul.f32 %v1719_v60, %v1711_v37 }
 0x405   :  { %v562_v63 = vmul.f32 %v1721_v61, %v1713_v43 }
 0x406   :  { %1596 = vmatmul.mubr.msk.f32.vlgmr.msra.gmra.mrb[8].mxu0 %vm517_vm2, %v563_v62 }
 0x407   :  { %1591 = vmatmul.mubr.msk.f32.vlgmr.msra.gmra.mrb[4].mxu1 %vm517_vm2, %v562_v63  ;;  %1605 = vmatprep.mubr.msk.f32.mxu0 %vm1743_vm1, %v1742_v38 }
 0x408   :  { %v1723_v8 = vpop.eup %1722  ;;  %1599 = vmatpush3.msra.mxu1 %v719_v7  ;;  %1600 = vmatprep.mubr.msk.f32.mxu1 %vm1743_vm1, %v1742_v38  ;;  %vm1464_vm1 = vcmask 25600  }
 0x409   :  { %v564_v9 = vmul.f32 %v1723_v8, %v1715_v46  ;;  %1667 = vmatprep.subr.bf16.mxu1 %v1666_v3 }
 0x40b   :  { %1601 = vmatmul.mubr.msk.f32.vlgmr.msra.gmra.mrb[6].mxu1 %vm517_vm2, %v564_v9 }
 0x40c   :  { %1669 = vmatpush3.bf16.msra.mxu1 %v1666_v3 }
 0x40d   :  { %1671 = vmatprep.subr.bf16.mxu1 %v1670_v10 }
 0x410   :  { %1673 = vmatpush3.bf16.msra.mxu1 %v1670_v10 }
 0x42f   :  { %v553_v11 = vpop.xlane.xlu1 %552 }
 0x430   :  { %v557_v12 = vmax.f32 %v553_v11, 1e-20 }
 0x432   :  { %1724 = vrcp.f32 %v557_v12 }
 0x433   :  { %v795_v13 = vpop.permute.xlu1 %794 }
 0x434   :  { %1604 = vmatpush3.msra.mxu0 %v795_v13  ;;  %v1118_v13 = vld [vmem:[%s2092_s5 + $0x30] sm:$0xff] }
 0x43c   :  { %v1725_v14 = vpop.eup %1724 }
 0x43d   :  { %v565_v15 = vmul.f32 %v1725_v14, %v1717_v52  ;;  %v1115_v52 = vld [vmem:[%s2092_s5 + $0x18] sm:$0xff] }
 0x43e   :  { %v1686_v53 = vpack.c.bf16 %v1115_v52, %v1114_v49  ;;  %v1119_v14 = vld [vmem:[%s2092_s5 + $0x38] sm:$0xff] }
 0x43f   :  { %1606 = vmatmul.mubr.msk.f32.vlgmr.msra.gmra.mrb[10].mxu0 %vm517_vm2, %v565_v15  ;;  %v1694_v15 = vpack.c.bf16 %v1119_v14, %v1118_v13 }
 0x4d9   :  { %v714_v16 = vpop.f32.mrb[8].mxu0 }
 0x4da   :  { %v638_v17 = vpop.f32.mrb[4].mxu1  ;;  %v1597_v18 = vpop.f32.mrb[9].mxu0 }
 0x4db   :  { %v1592_v19 = vpop.f32.mrb[5].mxu1  ;;  %1616 = vmatprep.mubr.msk.f32.mxu1 %vm38_vm0, %v638_v17 }
 0x4dc   :  { %1617 = vmatmul.mubr.msk.f32.vlgmr.msra.gmra.mrb[8].mxu1 %vm38_vm0, %v714_v16 }
 0x4de   :  { %v790_v20 = vpop.f32.mrb[6].mxu1 }
 0x4df   :  { %v1602_v21 = vpop.f32.mrb[7].mxu1  ;;  %1619 = vmatprep.mubr.msk.f32.mxu1 %vm38_vm0, %v790_v20 }
 0x512   :  { %v866_v22 = vpop.f32.mrb[10].mxu0 }
 0x513   :  { %v1607_v23 = vpop.f32.mrb[11].mxu0  ;;  %1620 = vmatmul.mubr.msk.f32.gmra.mrb[10].mxu1 %vm38_vm0, %v866_v22 }
 0x5af   :  { %v1618_v24 = vpop.f32.mrb[8].mxu1 }
 0x5b0   :  { %v1933_v25 = vadd.f32 %v1618_v24, %v1799_v2  ;;  %v952_v26 = vpop.f32.mrb[9].mxu1  ;;  %v1007_v2 = vld [vmem:[%s2091_s4] sm:$0xff]  ;;  %v1223_v24 = vld [vmem:[%s2093_s6 + $0x8] sm:$0xff] }
 0x5b1   :  { %v1936_v27 = vadd.f32 %v952_v26, %v1789_v0  ;;  %v1008_v0 = vld [vmem:[%s2091_s4 + $0x8] sm:$0xff]  ;;  %v1225_v26 = vld [vmem:[%s2093_s6 + $0x18] sm:$0xff]  ;;  %vm1231_vm4 = vcmp.ge.f32.partialorder %v1223_v24, 0.2 }
 0x5b2   :  { %v976_v28 = vmul.f32 %v1933_v25, %v1933_v25  ;;  %v1674_v33 = vpack.c.bf16 %v1008_v0, %v1007_v2  ;;  %vm1233_vm5 = vcmp.ge.f32.partialorder %v1225_v26, 0.2 }
 0x5b3   :  { %v975_v29 = vmul.f32 %v1936_v27, %v1936_v27  ;;  %v1241_v2 = vsel %vm1233_vm5, 1.25, %v1742_v38 }
 0x5b4   :  { %v982_v30 = vsel %vm38_vm0, %v976_v28, 0.0  ;;  %1675 = vmatprep.subr.bf16.mxu0 %v1674_v33  ;;  %v1222_v28 = vld [vmem:[%s2093_s6] sm:$0xff] }
 0x5b5   :  { %983 = vadd.xlane.f32.xlu1 %v982_v30  ;;  %v979_v31 = vsel %vm38_vm0, %v975_v29, 0.0  ;;  %1677 = vmatpush3.bf16.msra.mxu0 %v1674_v33  ;;  %v1224_v29 = vld [vmem:[%s2093_s6 + $0x10] sm:$0xff]  ;;  %vm1230_vm6 = vcmp.ge.f32.partialorder %v1222_v28, 0.2 }
 0x5b6   :  { %980 = vadd.xlane.f32.xlu0 %v979_v31  ;;  %1679 = vmatprep.subr.bf16.mxu0 %v1678_v35  ;;  %vm1232_vm7 = vcmp.ge.f32.partialorder %v1224_v29, 0.2  ;;  %v1239_v31 = vsel %vm1231_vm4, 1.25, %v1742_v38  ;;  %v1238_v33 = vsel %vm1230_vm6, 1.25, %v1742_v38 }
 0x5b7   :  { %v1240_v34 = vsel %vm1232_vm7, 1.25, %v1742_v38 }
 0x5b9   :  { %1681 = vmatpush3.bf16.msra.mxu0 %v1678_v35 }
 0x5e6   :  { %v1621_v36 = vpop.f32.mrb[10].mxu1 }
 0x5e7   :  { %v962_v37 = vpop.f32.mrb[11].mxu1  ;;  %v1957_v43 = vadd.f32 %v1621_v36, %v1810_v6  ;;  %v1112_v6 = vld [vmem:[%s2092_s5] sm:$0xff] }
 0x5e8   :  { %v1960_v44 = vadd.f32 %v962_v37, %v1794_v1  ;;  %v1113_v1 = vld [vmem:[%s2092_s5 + $0x8] sm:$0xff] }
 0x5e9   :  { %v978_v47 = vmul.f32 %v1957_v43, %v1957_v43  ;;  %v1682_v51 = vpack.c.bf16 %v1113_v1, %v1112_v6 }
 0x5ea   :  { %v977_v45 = vmul.f32 %v1960_v44, %v1960_v44 }
 0x5eb   :  { %v988_v48 = vsel %vm38_vm0, %v978_v47, 0.0  ;;  %1683 = vmatprep.subr.bf16.mxu1 %v1682_v51 }
 0x5ec   :  { %v985_v46 = vsel %vm38_vm0, %v977_v45, 0.0  ;;  %1685 = vmatpush3.bf16.msra.mxu1 %v1682_v51 }
 0x5ed   :  { %986 = vadd.xlane.f32.xlu0 %v985_v46  ;;  %1687 = vmatprep.subr.bf16.mxu1 %v1686_v53 }
 0x5f0   :  { %1689 = vmatpush3.bf16.msra.mxu1 %v1686_v53 }
 0x5f1   :  { %989 = vadd.xlane.f32.xlu0 %v988_v48  ;;  %1691 = vmatprep.subr.bf16.mxu1 %v1690_v56 }
 0x5f4   :  { %1693 = vmatpush3.bf16.msra.mxu1 %v1690_v56  ;;  %v1226_v56 = vld [vmem:[%s2093_s6 + $0x20] sm:$0xff] }
 0x5f5   :  { %1695 = vmatprep.subr.bf16.mxu1 %v1694_v15  ;;  %vm1234_vm10 = vcmp.ge.f32.partialorder %v1226_v56, 0.2 }
 0x5f8   :  { %1697 = vmatpush3.bf16.msra.mxu1 %v1694_v15 }
 0x642   :  { %v984_v57 = vpop.xlane.xlu1 %983 }
 0x643   :  { %v992_v39 = vmul.f32 0.03125, %v984_v57  ;;  %v981_v42 = vpop.xlane.xlu0 %980  ;;  %v1228_v57 = vld [vmem:[%s2093_s6 + $0x30] sm:$0xff] }
 0x644   :  { %v991_v40 = vmul.f32 0.03125, %v981_v42  ;;  %vm1236_vm11 = vcmp.ge.f32.partialorder %v1228_v57, 0.2  ;;  %v1243_v42 = vsel %vm1235_vm8, 1.25, %v1742_v38 }
 0x645   :  { %v996_v58 = vadd.f32 1e-06, %v992_v39 }
 0x646   :  { %v995_v41 = vadd.f32 1e-06, %v991_v40  ;;  %v1245_v40 = vsel %vm1237_vm9, 1.25, %v1742_v38 }
 0x647   :  { %1726 = vrsqrt.f32 %v996_v58 }
 0x648   :  { %1728 = vrsqrt.f32 %v995_v41 }
 0x651   :  { %v1727_v59 = vpop.eup %1726 }
 0x652   :  { %v1729_v60 = vpop.eup %1728  ;;  %v1004_v62 = vmul.f32 %v1727_v59, %v1933_v25  ;;  %v1242_v59 = vsel %vm1234_vm10, 1.25, %v1742_v38 }
 0x653   :  { %v1003_v61 = vmul.f32 %v1729_v60, %v1936_v27  ;;  %v1244_v60 = vsel %vm1236_vm11, 1.25, %v1742_v38 }
 0x655   :  { %1630 = vmatprep.mubr.msk.f32.mxu0 %vm38_vm0, %v1003_v61 }
 0x656   :  { %1631 = vmatmul.mubr.msk.f32.vlgmr.msra.gmra.mrb[12].mxu0 %vm38_vm0, %v1004_v62 }
 0x67a   :  { %v987_v63 = vpop.xlane.xlu0 %986 }
 0x67b   :  { %v993_v3 = vmul.f32 0.03125, %v987_v63 }
 0x67d   :  { %v997_v4 = vadd.f32 1e-06, %v993_v3 }
 0x67e   :  { %v990_v5 = vpop.xlane.xlu0 %989 }
 0x67f   :  { %1730 = vrsqrt.f32 %v997_v4  ;;  %v994_v7 = vmul.f32 0.03125, %v990_v5 }
 0x681   :  { %v998_v8 = vadd.f32 1e-06, %v994_v7 }
 0x683   :  { %1732 = vrsqrt.f32 %v998_v8 }
 0x689   :  { %v1731_v9 = vpop.eup %1730 }
 0x68a   :  { %v1005_v10 = vmul.f32 %v1731_v9, %v1960_v44 }
 0x68c   :  { %1633 = vmatprep.mubr.msk.f32.mxu0 %vm38_vm0, %v1005_v10 }
 0x68d   :  { %v1733_v11 = vpop.eup %1732 }
 0x68e   :  { %v1006_v12 = vmul.f32 %v1733_v11, %v1957_v43 }
 0x690   :  { %1634 = vmatmul.mubr.msk.f32.gmra.mrb[14].mxu0 %vm38_vm0, %v1006_v12 }
 0x729   :  { %v1632_v16 = vpop.f32.mrb[12].mxu0 }
 0x72a   :  { %v1089_v17 = vpop.f32.mrb[13].mxu0  ;;  %v1109_v19 = vmax.f32 %v1632_v16, 0.0 }
 0x72b   :  { %v1108_v18 = vmax.f32 %v1089_v17, 0.0 }
 0x72d   :  { %1652 = vmatprep.mubr.msk.f32.mxu1 %vm1120_vm3, %v1108_v18 }
 0x72e   :  { %1653 = vmatmul.mubr.msk.f32.vlgmr.msra.gmra.mrb[12].mxu1 %vm1120_vm3, %v1109_v19 }
 0x763   :  { %v1635_v20 = vpop.f32.mrb[14].mxu0 }
 0x764   :  { %v1099_v21 = vpop.f32.mrb[15].mxu0  ;;  %v1111_v23 = vmax.f32 %v1635_v20, 0.0 }
 0x765   :  { %v1110_v22 = vmax.f32 %v1099_v21, 0.0 }
 0x767   :  { %1655 = vmatprep.mubr.msk.f32.mxu1 %vm1120_vm3, %v1110_v22 }
 0x768   :  { %1656 = vmatmul.mubr.msk.f32.gmra.mrb[14].mxu1 %vm1120_vm3, %v1111_v23 }
 0x801   :  { %v1654_v30 = vpop.f32.mrb[12].mxu1 }
 0x802   :  { %v1219_v0 = vadd.f32 %v1654_v30, %v1933_v25  ;;  %v1199_v32 = vpop.f32.mrb[13].mxu1 }
 0x803   :  { %v1218_v35 = vadd.f32 %v1199_v32, %v1936_v27 }
 0x804   :  { %v1247_v36 = vmul.f32 %v1239_v31, %v1219_v0  ;;  %v1249_v37 = vmul.f32 %v1241_v2, %v1219_v0 }
 0x805   :  { %v1246_v45 = vmul.f32 %v1238_v33, %v1218_v35  ;;  %v1248_v46 = vmul.f32 %v1240_v34, %v1218_v35 }
 0x806   :  { %v1282_v47 = vmul.f32 %v1247_v36, %v1247_v36  ;;  %v1255_v48 = vmul.f32 %v1249_v37, %v1247_v36  ;;  %v1305_v51 = vmul.f32 %v1249_v37, %v1249_v37 }
 0x807   :  { %v1281_v6 = vmul.f32 %v1246_v45, %v1246_v45  ;;  %v1254_v1 = vmul.f32 %v1248_v46, %v1246_v45  ;;  %v1304_v52 = vmul.f32 %v1248_v46, %v1248_v46 }
 0x808   :  { %v1286_v49 = vsel %vm38_vm0, %v1282_v47, 0.0  ;;  %v1309_v53 = vsel %vm38_vm0, %v1305_v51, 0.0  ;;  %v1259_v15 = vsel %vm38_vm0, %v1255_v48, 0.0 }
 0x809   :  { %1287 = vadd.xlane.f32.xlu1 %v1286_v49  ;;  %v1283_v25 = vsel %vm38_vm0, %v1281_v6, 0.0  ;;  %v1306_v27 = vsel %vm38_vm0, %v1304_v52, 0.0  ;;  %v1256_v17 = vsel %vm38_vm0, %v1254_v1, 0.0 }
 0x80a   :  { %1284 = vadd.xlane.f32.xlu0 %v1283_v25 }
 0x80d   :  { %1310 = vadd.xlane.f32.xlu1 %v1309_v53 }
 0x80e   :  { %1307 = vadd.xlane.f32.xlu0 %v1306_v27 }
 0x83b   :  { %v1657_v39 = vpop.f32.mrb[14].mxu1 }
 0x83c   :  { %v1221_v58 = vadd.f32 %v1657_v39, %v1957_v43  ;;  %v1209_v41 = vpop.f32.mrb[15].mxu1 }
 0x83d   :  { %v1220_v61 = vadd.f32 %v1209_v41, %v1960_v44 }
 0x83e   :  { %v1251_v62 = vmul.f32 %v1243_v42, %v1221_v58  ;;  %v1253_v63 = vmul.f32 %v1245_v40, %v1221_v58 }
 0x83f   :  { %v1250_v3 = vmul.f32 %v1242_v59, %v1220_v61  ;;  %v1252_v4 = vmul.f32 %v1244_v60, %v1220_v61 }
 0x840   :  { %v1355_v5 = vmul.f32 %v1251_v62, %v1251_v62  ;;  %v1405_v7 = vmul.f32 %v1253_v63, %v1247_v36  ;;  %v1378_v11 = vmul.f32 %v1253_v63, %v1253_v63  ;;  %v1432_v13 = vmul.f32 %v1251_v62, %v1249_v37 }
 0x841   :  { %v1354_v8 = vmul.f32 %v1250_v3, %v1250_v3  ;;  %v1404_v9 = vmul.f32 %v1252_v4, %v1246_v45  ;;  %v1377_v12 = vmul.f32 %v1252_v4, %v1252_v4  ;;  %v1431_v38 = vmul.f32 %v1250_v3, %v1248_v46 }
 0x842   :  { %v1359_v10 = vsel %vm38_vm0, %v1355_v5, 0.0  ;;  %v1382_v44 = vsel %vm38_vm0, %v1378_v11, 0.0  ;;  %v1332_v16 = vmul.f32 %v1253_v63, %v1251_v62  ;;  %v1331_v18 = vmul.f32 %v1252_v4, %v1250_v3 }
 0x843   :  { %1360 = vadd.xlane.f32.xlu1 %v1359_v10  ;;  %v1356_v43 = vsel %vm38_vm0, %v1354_v8, 0.0  ;;  %v1379_v14 = vsel %vm38_vm0, %v1377_v12, 0.0  ;;  %v1409_v21 = vsel %vm38_vm0, %v1405_v7, 0.0  ;;  %v1406_v22 = vsel %vm38_vm0, %v1404_v9, 0.0 }
 0x844   :  { %1357 = vadd.xlane.f32.xlu0 %v1356_v43  ;;  %v1336_v19 = vsel %vm38_vm0, %v1332_v16, 0.0  ;;  %v1333_v20 = vsel %vm38_vm0, %v1331_v18, 0.0  ;;  %v1436_v23 = vsel %vm38_vm0, %v1432_v13, 0.0  ;;  %v1433_v24 = vsel %vm38_vm0, %v1431_v38, 0.0 }
 0x845   :  { %vm1462_vm0 = vcmask 23552  }
 0x847   :  { %1383 = vadd.xlane.f32.xlu1 %v1382_v44 }
 0x848   :  { %1380 = vadd.xlane.f32.xlu0 %v1379_v14 }
 0x84b   :  { %1260 = vadd.xlane.f32.xlu1 %v1259_v15 }
 0x84c   :  { %1257 = vadd.xlane.f32.xlu0 %v1256_v17 }
 0x84f   :  { %1337 = vadd.xlane.f32.xlu1 %v1336_v19 }
 0x850   :  { %1334 = vadd.xlane.f32.xlu0 %v1333_v20 }
 0x853   :  { %1410 = vadd.xlane.f32.xlu1 %v1409_v21 }
 0x854   :  { %1407 = vadd.xlane.f32.xlu0 %v1406_v22 }
 0x857   :  { %1437 = vadd.xlane.f32.xlu1 %v1436_v23 }
 0x858   :  { %1434 = vadd.xlane.f32.xlu0 %v1433_v24 }
 0x896   :  { %v1288_v26 = vpop.xlane.xlu1 %1287 }
 0x897   :  { %v1298_v28 = vrot.slane %v1288_v26, %v1880_v50  ;;  %v1285_v29 = vpop.xlane.xlu0 %1284 }
 0x898   :  { %v1294_v30 = vrot.slane %v1285_v29, %v1880_v50 }
 0x89a   :  { %v1311_v31 = vpop.xlane.xlu1 %1310  ;;  %v1299_v2 = vsel %vm1274_vm12, %v1298_v28, %v1294_v30 }
 0x89b   :  { %v1321_v0 = vrot.slane %v1311_v31, %v1880_v50  ;;  %v1308_v32 = vpop.xlane.xlu0 %1307  ;;  %v1301_v33 = vsel %vm1277_vm13, %v1299_v2, 0.0 }
 0x89c   :  { %v1317_v34 = vrot.slane %v1308_v32, %v1880_v50  ;;  %1302 = vadd.xlane.f32.xlu0 %v1301_v33 }
 0x89e   :  { %v1322_v35 = vsel %vm1274_vm12, %v1321_v0, %v1317_v34 }
 0x89f   :  { %v1324_v36 = vsel %vm1277_vm13, %v1322_v35, 0.0 }
 0x8a0   :  { %1325 = vadd.xlane.f32.xlu1 %v1324_v36 }
 0x8d0   :  { %v1361_v37 = vpop.xlane.xlu1 %1360 }
 0x8d1   :  { %v1371_v45 = vrot.slane %v1361_v37, %v1880_v50  ;;  %v1358_v46 = vpop.xlane.xlu0 %1357 }
 0x8d2   :  { %v1367_v47 = vrot.slane %v1358_v46, %v1880_v50 }
 0x8d4   :  { %v1384_v48 = vpop.xlane.xlu1 %1383  ;;  %v1372_v6 = vsel %vm1274_vm12, %v1371_v45, %v1367_v47 }
 0x8d5   :  { %v1394_v1 = vrot.slane %v1384_v48, %v1880_v50  ;;  %v1381_v49 = vpop.xlane.xlu0 %1380  ;;  %v1374_v51 = vsel %vm1277_vm13, %v1372_v6, 0.0 }
 0x8d6   :  { %v1390_v25 = vrot.slane %v1381_v49, %v1880_v50  ;;  %1375 = vadd.xlane.f32.xlu0 %v1374_v51 }
 0x8d8   :  { %v1261_v52 = vpop.xlane.xlu1 %1260  ;;  %v1395_v53 = vsel %vm1274_vm12, %v1394_v1, %v1390_v25 }
 0x8d9   :  { %v1273_v27 = vrot.slane %v1261_v52, %v1880_v50  ;;  %v1258_v54 = vpop.xlane.xlu0 %1257  ;;  %v1397_v55 = vsel %vm1277_vm13, %v1395_v53, 0.0 }
 0x8da   :  { %v1269_v56 = vrot.slane %v1258_v54, %v1880_v50  ;;  %1398 = vadd.xlane.f32.xlu1 %v1397_v55 }
 0x8dc   :  { %v1338_v57 = vpop.xlane.xlu1 %1337  ;;  %v1275_v39 = vsel %vm1274_vm12, %v1273_v27, %v1269_v56 }
 0x8dd   :  { %v1348_v42 = vrot.slane %v1338_v57, %v1880_v50  ;;  %v1335_v40 = vpop.xlane.xlu0 %1334  ;;  %v1278_v58 = vsel %vm1277_vm13, %v1275_v39, 0.0 }
 0x8de   :  { %v1344_v41 = vrot.slane %v1335_v40, %v1880_v50  ;;  %1279 = vadd.xlane.f32.xlu0 %v1278_v58 }
 0x8e0   :  { %v1411_v59 = vpop.xlane.xlu1 %1410  ;;  %v1349_v60 = vsel %vm1274_vm12, %v1348_v42, %v1344_v41 }
 0x8e1   :  { %v1421_v61 = vrot.slane %v1411_v59, %v1880_v50  ;;  %v1408_v62 = vpop.xlane.xlu0 %1407  ;;  %v1351_v63 = vsel %vm1277_vm13, %v1349_v60, 0.0 }
 0x8e2   :  { %v1417_v3 = vrot.slane %v1408_v62, %v1880_v50  ;;  %1352 = vadd.xlane.f32.xlu1 %v1351_v63 }
 0x8e4   :  { %v1438_v4 = vpop.xlane.xlu1 %1437  ;;  %v1422_v5 = vsel %vm1274_vm12, %v1421_v61, %v1417_v3 }
 0x8e5   :  { %v1448_v7 = vrot.slane %v1438_v4, %v1880_v50  ;;  %v1435_v8 = vpop.xlane.xlu0 %1434  ;;  %v1424_v9 = vsel %vm1277_vm13, %v1422_v5, 0.0 }
 0x8e6   :  { %v1444_v10 = vrot.slane %v1435_v8, %v1880_v50  ;;  %1425 = vadd.xlane.f32.xlu0 %v1424_v9 }
 0x8e8   :  { %v1449_v11 = vsel %vm1274_vm12, %v1448_v7, %v1444_v10 }
 0x8e9   :  { %v1451_v43 = vsel %vm1277_vm13, %v1449_v11, 0.0 }
 0x8ea   :  { %1452 = vadd.xlane.f32.xlu1 %v1451_v43 }
 0x929   :  { %v1303_v12 = vpop.xlane.xlu0 %1302 }
 0x92d   :  { %v1326_v13 = vpop.xlane.xlu1 %1325 }
 0x92e   :  { %v1327_v38 = vmul.f32 %v1326_v13, %v1303_v12 }
 0x930   :  { %v1328_v15 = vmax.f32 %v1327_v38, 1e-16 }
 0x932   :  { %1734 = vrsqrt.f32 %v1328_v15 }
 0x93c   :  { %v1735_v23 = vpop.eup %1734 }
 0x963   :  { %v1376_v44 = vpop.xlane.xlu0 %1375 }
 0x964   :  { %v1454_v14 = vmul.f32 %v1376_v44, %v1326_v13 }
 0x966   :  { %v1455_v16 = vmax.f32 %v1454_v14, 1e-16 }
 0x967   :  { %v1399_v17 = vpop.xlane.xlu1 %1398 }
 0x968   :  { %v1400_v18 = vmul.f32 %v1399_v17, %v1376_v44  ;;  %v1427_v19 = vmul.f32 %v1399_v17, %v1303_v12  ;;  %1736 = vrsqrt.f32 %v1455_v16 }
 0x96a   :  { %v1401_v20 = vmax.f32 %v1400_v18, 1e-16  ;;  %v1428_v21 = vmax.f32 %v1427_v19, 1e-16 }
 0x96b   :  { %v1280_v50 = vpop.xlane.xlu0 %1279 }
 0x96c   :  { %1738 = vrsqrt.f32 %v1401_v20  ;;  %v1330_v29 = vmul.f32 %v1735_v23, %v1280_v50 }
 0x96d   :  { %1740 = vrsqrt.f32 %v1428_v21 }
 0x96f   :  { %v1353_v22 = vpop.xlane.xlu1 %1352 }
 0x972   :  { %v1737_v24 = vpop.eup %1736 }
 0x973   :  { %v1426_v31 = vpop.xlane.xlu0 %1425 }
 0x976   :  { %v1739_v26 = vpop.eup %1738 }
 0x977   :  { %v1741_v28 = vpop.eup %1740  ;;  %v1403_v30 = vmul.f32 %v1739_v26, %v1353_v22  ;;  %v1453_v2 = vpop.xlane.xlu1 %1452 }
 0x978   :  { %v1430_v0 = vmul.f32 %v1741_v28, %v1426_v31  ;;  %v1457_v32 = vmul.f32 %v1737_v24, %v1453_v2 }
 0x979   :  { %v1459_v33 = vsel %vm1458_vm14, %v1330_v29, %v1403_v30 }
 0x97a   :  { %v1461_v34 = vsel %vm1460_vm15, %v1459_v33, %v1430_v0 }
 0x97b   :  { %v1463_v35 = vsel %vm1462_vm0, %v1461_v34, %v1457_v32 }
 0x97c   :  { %1465 = vst.msk [vmem:[%s2094_s7] sm:$0x3] %vm1464_vm1, %v1463_v35 }

</bundles_post_ra>
